<compile_context>
chip_gen: v5e
topology: v5e:2x2
jax: 0.10.0
libtpu: 0.0.40
codegen_flags: <defaults>
</compile_context>

<pallas_src>
import jax
import jax.numpy as jnp
from jax.experimental import pallas as pl
from jax.experimental.pallas import tpu as pltpu


def _make_iou_counts_kernel(num_classes, chunk, n_chunks):
    C = num_classes

    def kernel(logits_ref, labels_ref, i_ref, u_ref):
        # logits_ref: (1, C, T) in the logits' native dtype (bf16/f32)
        # labels_ref: (1, 1, T) int32 (ignore already remapped to C)
        # i_ref/u_ref: (1, 1, C, 1) f32 resident accumulators
        #              (their index_map ignores the spatial grid axis).
        s = pl.program_id(2)

        @pl.when(s == 0)
        def _():
            i_ref[...] = jnp.zeros_like(i_ref)
            u_ref[...] = jnp.zeros_like(u_ref)

        # Class-index iota hoisted out of the chunk loop (JAX does not CSE
        # broadcast_in_dim, so building it per chunk would re-emit it N times).
        cls = jax.lax.broadcasted_iota(jnp.int32, (C, chunk), 0)

        i_acc = jnp.zeros((C, 1), jnp.float32)
        u_acc = jnp.zeros((C, 1), jnp.float32)

        # Fully-unrolled chunk loop (the fori_loop(..., unroll=True) form)
        # with *static* 128-aligned lane offsets, so every ref slice lowers
        # to a plain static slice.  Each chunk's live set is ~chunk-sized
        # instead of materializing several (C, T) intermediates.
        for j in range(n_chunks):
            sl = pl.ds(j * chunk, chunk)
            x = logits_ref[0, :, sl]                      # (C, chunk), native dtype
            lab = labels_ref[0, :, sl]                    # (1, chunk), int32
            # torch.argmax over classes: max, then min index achieving it
            # (first-occurrence tie-break).
            m = jnp.max(x, axis=0, keepdims=True)         # (1, chunk)
            preds = jnp.min(jnp.where(x == m, cls, C), axis=0, keepdims=True)
            err_f = (preds != lab).astype(jnp.float32)    # (1, chunk)
            # one-hot over classes 0..C-1; ignore/padding pixels (label == C)
            # give an all-zero column, matching the [..., :num_classes] slice.
            onehot_f = (lab == cls).astype(jnp.float32)   # (C, chunk)
            u_acc = u_acc + jnp.sum(onehot_f, axis=1, keepdims=True)
            i_acc = i_acc + jnp.sum(onehot_f * err_f, axis=1, keepdims=True)

        i_ref[...] += i_acc[None, None]
        u_ref[...] += u_acc[None, None]

    return kernel


def iou_re(logits, labels, ignore_index=255, num_classes=19,
           spatial_tile=32768, chunk=512, ncores=1, core_parallel=False):
    """Equivalent of IOU_re.forward(logits, labels).

    On v7x (2 TensorCores/chip) pass ncores=2, core_parallel=True so the
    leading grid axis is sharded across cores even when B == 1.  Leave the
    defaults (ncores=1) on v5e / v6e (single TensorCore).
    """
    B, C, H, W = logits.shape
    assert C == num_classes
    assert chunk % 128 == 0 and spatial_tile % chunk == 0

    # F.interpolate(labels.unsqueeze(1).float(), size=(H, W), mode='nearest'):
    #   src_idx = floor(dst_idx * in_size / out_size)
    Hl, Wl = labels.shape[1], labels.shape[2]
    ri = (jnp.arange(H) * Hl) // H
    ci = (jnp.arange(W) * Wl) // W
    labels_r = labels[:, ri[:, None], ci[None, :]].astype(jnp.int32)   # (B, H, W)
    # labels[labels == ignore_index] = num_classes (fused with the gather)
    labels_r = jnp.where(labels_r == ignore_index, num_classes, labels_r)

    HW = H * W
    # Lane-dense spatial DMA tile: multiple of `chunk` (itself a multiple of
    # 128), capped at `spatial_tile`.
    T = int(min(spatial_tile, chunk * pl.cdiv(HW, chunk)))
    n_chunks = T // chunk
    tiles_per_core = int(pl.cdiv(pl.cdiv(HW, T), ncores))
    HW_pad = int(ncores * tiles_per_core * T)

    logits_f = logits.reshape(B, C, HW)          # native dtype: bf16 stays bf16 on DMA
    labels_f = labels_r.reshape(B, 1, HW)
    if HW_pad != HW:
        # Padded labels get value num_classes => contribute nothing to i or u;
        # the logits padding value is irrelevant.
        logits_f = jnp.pad(logits_f, ((0, 0), (0, 0), (0, HW_pad - HW)))
        labels_f = jnp.pad(labels_f, ((0, 0), (0, 0), (0, HW_pad - HW)),
                           constant_values=num_classes)

    kernel = _make_iou_counts_kernel(num_classes, chunk, n_chunks)

    # v7x only: CORE_PARALLEL guarantees the ncores axis maps onto the two
    # TensorCores; plain "parallel" barely changes codegen.
    core_sem = (pltpu.CORE_PARALLEL if (ncores > 1 and core_parallel)
                else pltpu.ARBITRARY)

    i_cnt, u_cnt = pl.pallas_call(
        kernel,
        out_shape=(jax.ShapeDtypeStruct((ncores, B, C, 1), jnp.float32),
                   jax.ShapeDtypeStruct((ncores, B, C, 1), jnp.float32)),
        grid_spec=pltpu.PrefetchScalarGridSpec(
            num_scalar_prefetch=0,
            grid=(ncores, B, tiles_per_core),
            in_specs=[
                pl.BlockSpec((1, C, T),
                             lambda c, b, s: (b, 0, c * tiles_per_core + s)),
                pl.BlockSpec((1, 1, T),
                             lambda c, b, s: (b, 0, c * tiles_per_core + s)),
            ],
            out_specs=[
                pl.BlockSpec((1, 1, C, 1), lambda c, b, s: (c, b, 0, 0)),
                pl.BlockSpec((1, 1, C, 1), lambda c, b, s: (c, b, 0, 0)),
            ],
        ),
        compiler_params=pltpu.CompilerParams(
            dimension_semantics=(core_sem, pltpu.PARALLEL, pltpu.ARBITRARY),
            vmem_limit_bytes=32 * 1024 * 1024),
    )(logits_f, labels_f)

    i = jnp.sum(i_cnt[..., 0], axis=0)                   # (B, num_classes)
    u = jnp.sum(u_cnt[..., 0], axis=0)                   # (B, num_classes)

    num_zero = jnp.sum((u == 0).astype(jnp.int32))
    u_safe = jnp.where(u == 0, jnp.float32(1.0), u)
    denom = (num_classes * B - num_zero).astype(jnp.float32)
    re = jnp.sum(i / u_safe) / denom
    return re


def _iou_re_reference(logits, labels, ignore_index=255, num_classes=19):
    """Pure-JAX transcription of the PyTorch module, for a sanity check."""
    B, C, H, W = logits.shape
    Hl, Wl = labels.shape[1], labels.shape[2]
    ri = (jnp.arange(H) * Hl) // H
    ci = (jnp.arange(W) * Wl) // W
    lab = labels[:, ri[:, None], ci[None, :]].astype(jnp.int32)
    lab = jnp.where(lab == ignore_index, num_classes, lab)
    preds = jnp.argmax(logits, axis=1)
    err = (preds != lab).astype(jnp.float32)[:, None]                     # (B,1,H,W)
    onehot = jax.nn.one_hot(lab, num_classes + 1,
                            dtype=jnp.float32)[..., :num_classes]
    onehot = jnp.moveaxis(onehot, -1, 1)                                  # (B,C,H,W)
    i = jnp.sum(onehot * err, axis=(2, 3))
    u = jnp.sum(onehot, axis=(2, 3))
    num_zero = jnp.sum((u == 0).astype(jnp.int32))
    u = jnp.where(u == 0, 1.0, u)
    return jnp.sum(i / u) / (num_classes * B - num_zero)


if __name__ == "__main__":
    key = jax.random.PRNGKey(0)
    k1, k2 = jax.random.split(key)

    B, C, H, W = 2, 19, 16, 16
    logits_f32 = jax.random.normal(k1, (B, C, H, W), dtype=jnp.float32)
    # labels at 2x spatial resolution to exercise the nearest-interpolation path
    labels = jax.random.randint(k2, (B, 2 * H, 2 * W), 0, C).astype(jnp.int32)
    labels = labels.at[:, :2, :2].set(255)   # sprinkle some ignore pixels

    ref_f32 = _iou_re_reference(logits_f32, labels, 255, C)

    # Default config (single spatial tile at this small size).
    out_f32 = iou_re(logits_f32, labels, ignore_index=255, num_classes=C)
    jax.block_until_ready(out_f32)
    assert jnp.allclose(out_f32, ref_f32, atol=1e-5), (out_f32, ref_f32)

    # Exercise the multi-chunk path (2 chunks inside one tile).
    out_mc = iou_re(logits_f32, labels, ignore_index=255, num_classes=C,
                    chunk=128)
    jax.block_until_ready(out_mc)
    assert jnp.allclose(out_mc, ref_f32, atol=1e-5), (out_mc, ref_f32)

    # Exercise the multi-tile grid path (2 spatial tiles, accumulator reuse).
    out_mt = iou_re(logits_f32, labels, ignore_index=255, num_classes=C,
                    spatial_tile=128, chunk=128)
    jax.block_until_ready(out_mt)
    assert jnp.allclose(out_mt, ref_f32, atol=1e-5), (out_mt, ref_f32)

    # bf16 logits path: DMA'd and argmax'd in bf16; only count sums are f32.
    logits_bf16 = logits_f32.astype(jnp.bfloat16)
    out_bf16 = iou_re(logits_bf16, labels, ignore_index=255, num_classes=C)
    jax.block_until_ready(out_bf16)
    ref_bf16 = _iou_re_reference(logits_bf16, labels, 255, C)
    assert jnp.allclose(out_bf16, ref_bf16, atol=1e-5), (out_bf16, ref_bf16)

    print("KERNEL_OK")
</pallas_src>

<mosaic_0001>
module attributes {stable_mosaic.version = 11 : i64} {
  func.func @kernel(%arg0: i32, %arg1: i32, %arg2: i32, %arg3: memref<1x19x512xf32, #tpu.memory_space<vmem>>, %arg4: memref<1x1x512xi32, #tpu.memory_space<vmem>>, %arg5: memref<1x1x19x1xf32, #tpu.memory_space<vmem>>, %arg6: memref<1x1x19x1xf32, #tpu.memory_space<vmem>>) attributes {dimension_semantics = [#tpu.dimension_semantics<arbitrary>, #tpu.dimension_semantics<parallel>, #tpu.dimension_semantics<arbitrary>], iteration_bounds = array<i64: 1, 2, 1>, scalar_prefetch = 0 : i64, scratch_operands = 0 : i64, tpu.core_type = #tpu.core_type<tc>, window_params = [{transform_indices = @transform_0, window_bounds = array<i64: 1, 19, 512>}, {transform_indices = @transform_1, window_bounds = array<i64: 1, 1, 512>}, {transform_indices = @transform_2, window_bounds = array<i64: 1, 1, 19, 1>}, {transform_indices = @transform_3, window_bounds = array<i64: 1, 1, 19, 1>}]} {
    %c0_i32 = arith.constant 0 : i32
    %0 = arith.cmpi eq, %arg2, %c0_i32 : i32
    %1 = arith.extui %0 : i1 to i32
    %c0_i32_0 = arith.constant 0 : i32
    %2 = arith.cmpi ne, %1, %c0_i32_0 : i32
    scf.if %2 {
      %cst_27 = arith.constant 0.000000e+00 : f32
      %41 = vector.broadcast %cst_27 : f32 to vector<1x1x19x1xf32>
      %c0_28 = arith.constant 0 : index
      %c0_29 = arith.constant 0 : index
      %c0_30 = arith.constant 0 : index
      %c0_31 = arith.constant 0 : index
      %42 = vector.load %arg5[%c0_28, %c0_29, %c0_30, %c0_31] : memref<1x1x19x1xf32, #tpu.memory_space<vmem>>, vector<1x1x19x1xf32>
      tpu.vector_store %arg5[%c0_28, %c0_29, %c0_30, %c0_31], %41 {strides = array<i32>} : memref<1x1x19x1xf32, #tpu.memory_space<vmem>>, vector<1x1x19x1xf32>,
      %cst_32 = arith.constant 0.000000e+00 : f32
      %43 = vector.broadcast %cst_32 : f32 to vector<1x1x19x1xf32>
      %c0_33 = arith.constant 0 : index
      %c0_34 = arith.constant 0 : index
      %c0_35 = arith.constant 0 : index
      %c0_36 = arith.constant 0 : index
      %44 = vector.load %arg6[%c0_33, %c0_34, %c0_35, %c0_36] : memref<1x1x19x1xf32, #tpu.memory_space<vmem>>, vector<1x1x19x1xf32>
      tpu.vector_store %arg6[%c0_33, %c0_34, %c0_35, %c0_36], %43 {strides = array<i32>} : memref<1x1x19x1xf32, #tpu.memory_space<vmem>>, vector<1x1x19x1xf32>,
    } else {
    }
    %3 = tpu.iota {dimensions = array<i32: 0>} : vector<19x512xi32>
    %cst = arith.constant 0.000000e+00 : f32
    %4 = vector.broadcast %cst : f32 to vector<19x1xf32>
    %cst_1 = arith.constant 0.000000e+00 : f32
    %5 = vector.broadcast %cst_1 : f32 to vector<19x1xf32>
    %c0 = arith.constant 0 : index
    %c0_2 = arith.constant 0 : index
    %c0_3 = arith.constant 0 : index
    %6 = vector.load %arg3[%c0, %c0_2, %c0_3] : memref<1x19x512xf32, #tpu.memory_space<vmem>>, vector<1x19x512xf32>
    %7 = vector.shape_cast %6 : vector<1x19x512xf32> to vector<19x512xf32>
    %c0_4 = arith.constant 0 : index
    %c0_5 = arith.constant 0 : index
    %c0_6 = arith.constant 0 : index
    %8 = vector.load %arg4[%c0_4, %c0_5, %c0_6] : memref<1x1x512xi32, #tpu.memory_space<vmem>>, vector<1x1x512xi32>
    %9 = vector.shape_cast %8 : vector<1x1x512xi32> to vector<1x512xi32>
    %cst_7 = arith.constant dense<0xFF800000> : vector<512xf32>
    %10 = vector.multi_reduction <maximumf>, %7, %cst_7 [0] : vector<19x512xf32> to vector<512xf32>
    %11 = vector.shape_cast %10 : vector<512xf32> to vector<1x512xf32>
    %12 = vector.broadcast %11 : vector<1x512xf32> to vector<19x512xf32>
    %13 = arith.cmpf oeq, %7, %12 : vector<19x512xf32>
    %c19_i32 = arith.constant 19 : i32
    %14 = vector.broadcast %c19_i32 : i32 to vector<19x512xi32>
    %15 = arith.select %13, %3, %14 : vector<19x512xi1>, vector<19x512xi32>
    %cst_8 = arith.constant dense<2147483647> : vector<512xi32>
    %16 = vector.multi_reduction <minsi>, %15, %cst_8 [0] : vector<19x512xi32> to vector<512xi32>
    %17 = vector.shape_cast %16 : vector<512xi32> to vector<1x512xi32>
    %18 = arith.cmpi ne, %17, %9 : vector<1x512xi32>
    %19 = arith.extui %18 : vector<1x512xi1> to vector<1x512xi32>
    %20 = arith.sitofp %19 : vector<1x512xi32> to vector<1x512xf32>
    %21 = vector.broadcast %9 : vector<1x512xi32> to vector<19x512xi32>
    %22 = arith.cmpi eq, %21, %3 : vector<19x512xi32>
    %23 = arith.extui %22 : vector<19x512xi1> to vector<19x512xi32>
    %24 = arith.sitofp %23 : vector<19x512xi32> to vector<19x512xf32>
    %cst_9 = arith.constant dense<0.000000e+00> : vector<19xf32>
    %25 = vector.multi_reduction <add>, %24, %cst_9 [1] : vector<19x512xf32> to vector<19xf32>
    %26 = vector.shape_cast %25 : vector<19xf32> to vector<19x1xf32>
    %27 = arith.addf %5, %26 : vector<19x1xf32>
    %28 = vector.broadcast %20 : vector<1x512xf32> to vector<19x512xf32>
    %29 = arith.mulf %24, %28 : vector<19x512xf32>
    %cst_10 = arith.constant dense<0.000000e+00> : vector<19xf32>
    %30 = vector.multi_reduction <add>, %29, %cst_10 [1] : vector<19x512xf32> to vector<19xf32>
    %31 = vector.shape_cast %30 : vector<19xf32> to vector<19x1xf32>
    %32 = arith.addf %4, %31 : vector<19x1xf32>
    %c0_11 = arith.constant 0 : index
    %c0_12 = arith.constant 0 : index
    %c0_13 = arith.constant 0 : index
    %c0_14 = arith.constant 0 : index
    %33 = vector.load %arg5[%c0_11, %c0_12, %c0_13, %c0_14] : memref<1x1x19x1xf32, #tpu.memory_space<vmem>>, vector<1x1x19x1xf32>
    %34 = vector.shape_cast %32 : vector<19x1xf32> to vector<1x1x19x1xf32>
    %35 = arith.addf %33, %34 : vector<1x1x19x1xf32>
    %c0_15 = arith.constant 0 : index
    %c0_16 = arith.constant 0 : index
    %c0_17 = arith.constant 0 : index
    %c0_18 = arith.constant 0 : index
    %36 = vector.load %arg5[%c0_15, %c0_16, %c0_17, %c0_18] : memref<1x1x19x1xf32, #tpu.memory_space<vmem>>, vector<1x1x19x1xf32>
    tpu.vector_store %arg5[%c0_15, %c0_16, %c0_17, %c0_18], %35 {strides = array<i32>} : memref<1x1x19x1xf32, #tpu.memory_space<vmem>>, vector<1x1x19x1xf32>,
    %c0_19 = arith.constant 0 : index
    %c0_20 = arith.constant 0 : index
    %c0_21 = arith.constant 0 : index
    %c0_22 = arith.constant 0 : index
    %37 = vector.load %arg6[%c0_19, %c0_20, %c0_21, %c0_22] : memref<1x1x19x1xf32, #tpu.memory_space<vmem>>, vector<1x1x19x1xf32>
    %38 = vector.shape_cast %27 : vector<19x1xf32> to vector<1x1x19x1xf32>
    %39 = arith.addf %37, %38 : vector<1x1x19x1xf32>
    %c0_23 = arith.constant 0 : index
    %c0_24 = arith.constant 0 : index
    %c0_25 = arith.constant 0 : index
    %c0_26 = arith.constant 0 : index
    %40 = vector.load %arg6[%c0_23, %c0_24, %c0_25, %c0_26] : memref<1x1x19x1xf32, #tpu.memory_space<vmem>>, vector<1x1x19x1xf32>
    tpu.vector_store %arg6[%c0_23, %c0_24, %c0_25, %c0_26], %39 {strides = array<i32>} : memref<1x1x19x1xf32, #tpu.memory_space<vmem>>, vector<1x1x19x1xf32>,
    return
  }
  func.func @transform_0(%arg0: i32, %arg1: i32, %arg2: i32) -> (i32, i32, i32) {
    %c1_i32 = arith.constant 1 : i32
    %0 = arith.muli %arg0, %c1_i32 : i32
    %1 = arith.addi %0, %arg2 : i32
    %c0_i32 = arith.constant 0 : i32
    %c0_i32_0 = arith.constant 0 : i32
    return %arg1, %c0_i32, %1 : i32, i32, i32
  }
  func.func @transform_1(%arg0: i32, %arg1: i32, %arg2: i32) -> (i32, i32, i32) {
    %c1_i32 = arith.constant 1 : i32
    %0 = arith.muli %arg0, %c1_i32 : i32
    %1 = arith.addi %0, %arg2 : i32
    %c0_i32 = arith.constant 0 : i32
    %c0_i32_0 = arith.constant 0 : i32
    return %arg1, %c0_i32, %1 : i32, i32, i32
  }
  func.func @transform_2(%arg0: i32, %arg1: i32, %arg2: i32) -> (i32, i32, i32, i32) {
    %c0_i32 = arith.constant 0 : i32
    %c0_i32_0 = arith.constant 0 : i32
    %c0_i32_1 = arith.constant 0 : i32
    return %arg0, %arg1, %c0_i32, %c0_i32_0 : i32, i32, i32, i32
  }
  func.func @transform_3(%arg0: i32, %arg1: i32, %arg2: i32) -> (i32, i32, i32, i32) {
    %c0_i32 = arith.constant 0 : i32
    %c0_i32_0 = arith.constant 0 : i32
    %c0_i32_1 = arith.constant 0 : i32
    return %arg0, %arg1, %c0_i32, %c0_i32_0 : i32, i32, i32, i32
  }
}

</mosaic_0001>

<bundles_post_ra>
// kernel: tpu_custom_call.1
= control target key start
LH: loop header
LB: loop body
LE: loop exit
PB: predicated region body
PF: predicated region fallthrough
CT: control target
= control target key end

     0   :  { %s823_s12 = smov 0   ;;  %s825_s13 = smov 0   ;;  %s1113_s0 = inlined_call_operand.vmem [shape: f32[2,19,512], index: 0, kind: input, shape index: {}]   ;;  %s1114_s1 = inlined_call_operand.vmem [shape: s32[2,1,512], index: 1, kind: input, shape index: {}]   ;;  %s1115_s2 = inlined_call_operand.vmem [shape: f32[1,2,19,1], index: 2, kind: output, shape index: {0}]   ;;  %s1116_s3 = inlined_call_operand.vmem [shape: f32[1,2,19,1], index: 3, kind: output, shape index: {1}]  }
   0x1   :  { %s827_s14 = smov 0  }
   0x2 LB: > { %s29_s15 = sadd.s32 1, %s796_s13  ;;  %p728_p0 = scmp.ge.s32.totalorder %s800_s14, 1  ;;  %s800_s14 = sphi %s827_s14, %s14_s14   ;;  %s796_s13 = sphi %s825_s13, %s1118_s13   ;;  %s792_s12 = sphi %s823_s12, %s1117_s12  }
   0x3   : > { %p31_p1 = scmp.ge.s32.totalorder %s29_s15, 2  ;;  %p194_p2 = scmp.lt.s32.totalorder %s800_s14, 3 }
   0x5   : > { %s1120_s15 = smov (%p31_p1, %s29_s15), 0  ;;  %p195_p3 = pnand %p728_p0, %p194_p2 }
   0x6   : > { %p247_p4 = scmp.lt.s32.totalorder (!%p195_p3), %s792_s12, 1 }
   0x7   : > { %198 = sbr.rel (%p195_p3) target bundleno = 200 (0xc8), region = 28 }
   0xc   : > { %v298_v0 = vlaneseq  ;;  %s1122_s12 = smov (!%p247_p4, %s792_s12), 1  ;;  %vm316_vm0 = vcmask 1042432   ;;  %v802_v16 = vmov 0.0  }
   0xd   : > { %s730_s16 = sshll.u32 %s1122_s12, 2  ;;  %s751_s17 = smul.u32 96, %s1122_s12 }
   0xe   : > { %v843_v1 = vshrl.u32 %v298_v0, 7  ;;  %s265_s20 = scalar_lea.vmem %s1114_s1, %s730_s16  ;;  %s752_s24 = smul.u32 24, %s1122_s12 }
   0xf   : > { %v314_v3 = vld [vmem:[%s265_s20] sm:$0xf]  ;;  %s856_s23 = scalar_lea.vmem %s1113_s0, %s751_s17 }
  0x10   : > { %v851_v2 = vadd.s32 16, %v843_v1  ;;  %v858_v4 = vperm.slane %v314_v3, 0  ;;  %v860_v5 = vperm.slane %v314_v3, 1  ;;  %v862_v6 = vperm.slane %v314_v3, 2  ;;  %v867_v8 = vld [vmem:[%s856_s23] sm:$0xff]  ;;  %v870_v9 = vld [vmem:[%s856_s23 + $0x8] sm:$0xff]  ;;  %s1031_s27 = scalar_lea.vmem %s1116_s3, %s752_s24  ;;  %s1047_s30 = scalar_lea.vmem %s1115_s2, %s752_s24 }
  0x11   : > { %v864_v7 = vperm.slane %v314_v3, 3  ;;  %v873_v10 = vld [vmem:[%s856_s23 + $0x10] sm:$0xff]  ;;  %v876_v11 = vld [vmem:[%s856_s23 + $0x18] sm:$0xff]  ;;  %v879_v12 = vld [vmem:[%s856_s23 + $0x20] sm:$0xff]  ;;  %v947_v50 = vadd.s32 8, %v843_v1 }
  0x12   : > { %vm456_vm1 = vcmp.eq.s32.totalorder %v858_v4, %v851_v2  ;;  %vm457_vm2 = vcmp.eq.s32.totalorder %v860_v5, %v851_v2  ;;  %vm458_vm3 = vcmp.eq.s32.totalorder %v862_v6, %v851_v2  ;;  %v890_v13 = vld [vmem:[%s856_s23 + $0x28] sm:$0xff]  ;;  %v893_v14 = vld [vmem:[%s856_s23 + $0x30] sm:$0xff]  ;;  %v896_v15 = vld [vmem:[%s856_s23 + $0x38] sm:$0xff]  ;;  %v315_v30 = vmax.f32 %v867_v8, %v879_v12 }
  0x13   : > { %vm459_vm4 = vcmp.eq.s32.totalorder %v864_v7, %v851_v2  ;;  %v899_v17 = vsel %vm456_vm1, 1.0, %v802_v16  ;;  %v902_v18 = vsel %vm457_vm2, 1.0, %v802_v16  ;;  %v905_v19 = vsel %vm458_vm3, 1.0, %v802_v16  ;;  %v911_v21 = vld [vmem:[%s856_s23 + $0x40] sm:$0x7] }
  0x14   : > { %v908_v20 = vsel %vm459_vm4, 1.0, %v802_v16  ;;  %v494_v22 = vsel %vm316_vm0, %v899_v17, 0.0  ;;  %v495_v23 = vsel %vm316_vm0, %v902_v18, 0.0  ;;  %v497_v24 = vsel %vm316_vm0, %v905_v19, 0.0  ;;  %v922_v26 = vld [vmem:[%s856_s23 + $0x48] sm:$0x7] }
  0x15   : > { %v499_v25 = vsel %vm316_vm0, %v908_v20, 0.0  ;;  %v496_v27 = vadd.f32 %v495_v23, %v494_v22  ;;  %v925_v28 = vld [vmem:[%s856_s23 + $0x50] sm:$0x7]  ;;  %v928_v29 = vld [vmem:[%s856_s23 + $0x58] sm:$0x7]  ;;  %v317_v31 = vsel %vm316_vm0, %v911_v21, -inf  ;;  %v325_v32 = vmax.f32 %v870_v9, %v890_v13 }
  0x16   : > { %v326_v33 = vsel %vm316_vm0, %v922_v26, -inf  ;;  %v334_v34 = vmax.f32 %v873_v10, %v893_v14  ;;  %v335_v35 = vsel %vm316_vm0, %v925_v28, -inf  ;;  %v343_v36 = vmax.f32 %v876_v11, %v896_v15 }
  0x17   : > { %v498_v37 = vadd.f32 %v497_v24, %v496_v27  ;;  %v318_v38 = vmax.f32 %v315_v30, %v317_v31  ;;  %v327_v39 = vmax.f32 %v325_v32, %v326_v33  ;;  %v344_v40 = vsel %vm316_vm0, %v928_v29, -inf }
  0x18   : > { %v336_v41 = vmax.f32 %v334_v34, %v335_v35  ;;  %v345_v42 = vmax.f32 %v343_v36, %v344_v40  ;;  %vm452_vm5 = vcmp.eq.s32.totalorder %v858_v4, %v947_v50  ;;  %vm453_vm6 = vcmp.eq.s32.totalorder %v860_v5, %v947_v50 }
  0x19   : > { %v500_v43 = vadd.f32 %v499_v25, %v498_v37  ;;  %v319_v44 = vrot.slane %v318_v38, 4  ;;  %v328_v45 = vrot.slane %v327_v39, 4  ;;  %vm448_vm7 = vcmp.eq.s32.totalorder %v858_v4, %v843_v1 }
  0x1a   : > { %v337_v46 = vrot.slane %v336_v41, 4  ;;  %v346_v47 = vrot.slane %v345_v42, 4  ;;  %vm449_vm8 = vcmp.eq.s32.totalorder %v860_v5, %v843_v1  ;;  %v958_v61 = vsel %vm448_vm7, 1.0, %v802_v16 }
  0x1b   : > { %501 = vadd.xlane.f32.xlu1 %v500_v43  ;;  %v320_v48 = vmax.f32 %v318_v38, %v319_v44  ;;  %v329_v49 = vmax.f32 %v327_v39, %v328_v45  ;;  %v961_v62 = vsel %vm449_vm8, 1.0, %v802_v16  ;;  %vm450_vm9 = vcmp.eq.s32.totalorder %v862_v6, %v843_v1 }
  0x1c   : > { %v338_v51 = vmax.f32 %v336_v41, %v337_v46  ;;  %v347_v52 = vmax.f32 %v345_v42, %v346_v47  ;;  %v484_v3 = vadd.f32 %v961_v62, %v958_v61  ;;  %vm451_vm10 = vcmp.eq.s32.totalorder %v864_v7, %v843_v1 }
  0x1d   : > { %v321_v53 = vrot.slane %v320_v48, 2  ;;  %v330_v54 = vrot.slane %v329_v49, 2  ;;  %v970_v24 = vsel %vm450_vm9, 1.0, %v802_v16  ;;  %v976_v30 = vsel %vm452_vm5, 1.0, %v802_v16 }
  0x1e   : > { %v339_v55 = vrot.slane %v338_v51, 2  ;;  %v348_v56 = vrot.slane %v347_v52, 2  ;;  %v982_v31 = vsel %vm453_vm6, 1.0, %v802_v16  ;;  %v985_v34 = vsel %vm451_vm10, 1.0, %v802_v16 }
  0x1f   : > { %v322_v57 = vmax.f32 %v320_v48, %v321_v53  ;;  %v331_v58 = vmax.f32 %v329_v49, %v330_v54  ;;  %v485_v35 = vadd.f32 %v970_v24, %v484_v3  ;;  %vm454_vm4 = vcmp.eq.s32.totalorder %v862_v6, %v947_v50 }
  0x20   : > { %v340_v59 = vmax.f32 %v338_v51, %v339_v55  ;;  %v349_v60 = vmax.f32 %v347_v52, %v348_v56  ;;  %v743_v51 = vsel %vm454_vm4, 1.0, %v802_v16 }
  0x21   : > { %v323_v63 = vrot.slane %v322_v57, 1  ;;  %v332_v0 = vrot.slane %v331_v58, 1  ;;  %v486_v48 = vadd.f32 %v985_v34, %v485_v35 }
  0x22   : > { %v341_v22 = vrot.slane %v340_v59, 1  ;;  %v350_v23 = vrot.slane %v349_v60, 1 }
  0x23   : > { %v324_v25 = vmax.f32 %v322_v57, %v323_v63  ;;  %v333_v27 = vmax.f32 %v331_v58, %v332_v0  ;;  %487 = vadd.xlane.f32.xlu0 %v486_v48  ;;  %v489_v58 = vadd.f32 %v982_v31, %v976_v30 }
  0x24   : > { %v342_v32 = vmax.f32 %v340_v59, %v341_v22  ;;  %v351_v33 = vmax.f32 %v349_v60, %v350_v23 }
  0x25   : > { %vm352_vm11 = vcmp.eq.f32.partialorder %v867_v8, %v324_v25  ;;  %vm353_vm12 = vcmp.eq.f32.partialorder %v870_v9, %v333_v27  ;;  %vm356_vm13 = vcmp.eq.f32.partialorder %v879_v12, %v324_v25  ;;  %vm357_vm14 = vcmp.eq.f32.partialorder %v890_v13, %v333_v27 }
  0x26   : > { %vm354_vm15 = vcmp.eq.f32.partialorder %v873_v10, %v342_v32  ;;  %vm355_vm1 = vcmp.eq.f32.partialorder %v876_v11, %v351_v33  ;;  %vm358_vm2 = vcmp.eq.f32.partialorder %v893_v14, %v342_v32  ;;  %vm359_vm3 = vcmp.eq.f32.partialorder %v896_v15, %v351_v33 }
  0x27   : > { %vm360_vm5 = vcmp.eq.f32.partialorder %v911_v21, %v324_v25  ;;  %vm361_vm6 = vcmp.eq.f32.partialorder %v922_v26, %v333_v27  ;;  %vm362_vm7 = vcmp.eq.f32.partialorder %v925_v28, %v342_v32  ;;  %vm363_vm8 = vcmp.eq.f32.partialorder %v928_v29, %v351_v33 }
  0x28   : > { %v364_v8 = vsel %vm352_vm11, %v843_v1, 19  ;;  %v365_v9 = vsel %vm353_vm12, %v843_v1, 19  ;;  %v366_v10 = vsel %vm354_vm15, %v843_v1, 19  ;;  %v367_v11 = vsel %vm355_vm1, %v843_v1, 19 }
  0x29   : > { %v368_v12 = vsel %vm356_vm13, %v947_v50, 19  ;;  %v369_v13 = vsel %vm357_vm14, %v947_v50, 19  ;;  %v370_v14 = vsel %vm358_vm2, %v947_v50, 19  ;;  %v371_v15 = vsel %vm359_vm3, %v947_v50, 19 }
  0x2a   : > { %v372_v21 = vsel %vm360_vm5, %v851_v2, 19  ;;  %v373_v26 = vsel %vm361_vm6, %v851_v2, 19  ;;  %v374_v28 = vsel %vm362_vm7, %v851_v2, 19  ;;  %v375_v29 = vsel %vm363_vm8, %v851_v2, 19 }
  0x2b   : > { %vm376_vm9 = vcmp.lt.s32.totalorder %v364_v8, %v368_v12  ;;  %v378_v1 = vsel %vm316_vm0, %v372_v21, 2147483647  ;;  %vm390_vm10 = vcmp.lt.s32.totalorder %v365_v9, %v369_v13  ;;  %v392_v36 = vsel %vm316_vm0, %v373_v26, 2147483647 }
  0x2c   : > { %v377_v37 = vsel %vm376_vm9, %v364_v8, %v368_v12  ;;  %v391_v38 = vsel %vm390_vm10, %v365_v9, %v369_v13  ;;  %vm404_vm11 = vcmp.lt.s32.totalorder %v366_v10, %v370_v14  ;;  %v406_v39 = vsel %vm316_vm0, %v374_v28, 2147483647 }
  0x2d   : > { %vm379_vm12 = vcmp.lt.s32.totalorder %v377_v37, %v378_v1  ;;  %vm393_vm13 = vcmp.lt.s32.totalorder %v391_v38, %v392_v36  ;;  %v405_v40 = vsel %vm404_vm11, %v366_v10, %v370_v14  ;;  %vm418_vm14 = vcmp.lt.s32.totalorder %v367_v11, %v371_v15 }
  0x2e   : > { %v380_v41 = vsel %vm379_vm12, %v377_v37, %v378_v1  ;;  %v394_v42 = vsel %vm393_vm13, %v391_v38, %v392_v36  ;;  %vm407_vm15 = vcmp.lt.s32.totalorder %v405_v40, %v406_v39  ;;  %v419_v2 = vsel %vm418_vm14, %v367_v11, %v371_v15 }
  0x2f   : > { %v381_v43 = vrot.slane %v380_v41, 4  ;;  %v395_v44 = vrot.slane %v394_v42, 4  ;;  %v408_v45 = vsel %vm407_vm15, %v405_v40, %v406_v39  ;;  %v420_v46 = vsel %vm316_vm0, %v375_v29, 2147483647 }
  0x30   : > { %v409_v47 = vrot.slane %v408_v45, 4  ;;  %vm421_vm1 = vcmp.lt.s32.totalorder %v419_v2, %v420_v46  ;;  %vm455_vm2 = vcmp.eq.s32.totalorder %v864_v7, %v947_v50  ;;  %vm293_vm7 = vcmask 2048  }
  0x31   : > { %vm382_vm3 = vcmp.lt.s32.totalorder %v380_v41, %v381_v43  ;;  %vm396_vm5 = vcmp.lt.s32.totalorder %v394_v42, %v395_v44  ;;  %v422_v49 = vsel %vm421_vm1, %v419_v2, %v420_v46  ;;  %v744_v60 = vsel %vm455_vm2, 1.0, %v802_v16  ;;  %297 = vst.msk [vmem:[%s1031_s27 + $0x10] sm:$0x7] %vm293_vm7, %v802_v16 }
  0x32   : > { %v383_v52 = vsel %vm382_vm3, %v380_v41, %v381_v43  ;;  %v397_v53 = vsel %vm396_vm5, %v394_v42, %v395_v44  ;;  %vm410_vm6 = vcmp.lt.s32.totalorder %v408_v45, %v409_v47  ;;  %v423_v54 = vrot.slane %v422_v49, 4  ;;  %294 = vst.msk [vmem:[%s1047_s30 + $0x10] sm:$0x7] %vm293_vm7, %v802_v16 }
  0x33   : > { %v384_v55 = vrot.slane %v383_v52, 2  ;;  %v398_v56 = vrot.slane %v397_v53, 2  ;;  %v411_v57 = vsel %vm410_vm6, %v408_v45, %v409_v47  ;;  %v490_v0 = vadd.f32 %v743_v51, %v489_v58 }
  0x34   : > { %v412_v59 = vrot.slane %v411_v57, 2  ;;  %vm424_vm4 = vcmp.lt.s32.totalorder %v422_v49, %v423_v54  ;;  %vm290_vm6 = vcmask 7168  }
  0x35   : > { %vm385_vm8 = vcmp.lt.s32.totalorder %v383_v52, %v384_v55  ;;  %vm399_vm9 = vcmp.lt.s32.totalorder %v397_v53, %v398_v56  ;;  %v425_v63 = vsel %vm424_vm4, %v422_v49, %v423_v54  ;;  %v491_v32 = vadd.f32 %v744_v60, %v490_v0  ;;  %295 = vst.msk [vmem:[%s1031_s27] sm:$0xff] %vm290_vm6, %v802_v16 }
  0x36   : > { %v386_v3 = vsel %vm385_vm8, %v383_v52, %v384_v55  ;;  %v400_v22 = vsel %vm399_vm9, %v397_v53, %v398_v56  ;;  %vm413_vm10 = vcmp.lt.s32.totalorder %v411_v57, %v412_v59  ;;  %v426_v50 = vrot.slane %v425_v63, 2  ;;  %296 = vst.msk [vmem:[%s1031_s27 + $0x8] sm:$0xff] %vm290_vm6, %v802_v16 }
  0x37   : > { %v387_v23 = vrot.slane %v386_v3, 1  ;;  %v401_v25 = vrot.slane %v400_v22, 1  ;;  %v414_v27 = vsel %vm413_vm10, %v411_v57, %v412_v59  ;;  %492 = vadd.xlane.f32.xlu0 %v491_v32  ;;  %292 = vst.msk [vmem:[%s1047_s30 + $0x8] sm:$0xff] %vm290_vm6, %v802_v16 }
  0x38   : > { %v415_v33 = vrot.slane %v414_v27, 1  ;;  %vm427_vm11 = vcmp.lt.s32.totalorder %v425_v63, %v426_v50  ;;  %291 = vst.msk [vmem:[%s1047_s30] sm:$0xff] %vm290_vm6, %v802_v16 }
  0x39   : > { %vm388_vm12 = vcmp.lt.s32.totalorder %v386_v3, %v387_v23  ;;  %vm402_vm13 = vcmp.lt.s32.totalorder %v400_v22, %v401_v25  ;;  %v428_v35 = vsel %vm427_vm11, %v425_v63, %v426_v50  ;;  %v546_v63 = vld [vmem:[%s1047_s30 + $0x10] sm:$0x7] }
  0x3a   : > { %v389_v8 = vsel %vm388_vm12, %v386_v3, %v387_v23  ;;  %v403_v9 = vsel %vm402_vm13, %v400_v22, %v401_v25  ;;  %vm416_vm14 = vcmp.lt.s32.totalorder %v414_v27, %v415_v33  ;;  %v429_v10 = vrot.slane %v428_v35, 1 }
  0x3b   : > { %v417_v11 = vsel %vm416_vm14, %v414_v27, %v415_v33  ;;  %vm436_vm15 = vcmp.ne.s32.totalorder %v389_v8, %v858_v4  ;;  %vm437_vm1 = vcmp.ne.s32.totalorder %v403_v9, %v860_v5 }
  0x3c   : > { %vm430_vm2 = vcmp.lt.s32.totalorder %v428_v35, %v429_v10  ;;  %vm438_vm3 = vcmp.ne.s32.totalorder %v417_v11, %v862_v6  ;;  %v733_v12 = vsel %vm436_vm15, 1.0, %v802_v16  ;;  %v734_v13 = vsel %vm437_vm1, 1.0, %v802_v16  ;;  %v555_v49 = vld [vmem:[%s1031_s27] sm:$0xff] }
  0x3d   : > { %v431_v14 = vsel %vm430_vm2, %v428_v35, %v429_v10  ;;  %v735_v15 = vsel %vm438_vm3, 1.0, %v802_v16  ;;  %v506_v21 = vperm.slane %v733_v12, 0  ;;  %v507_v26 = vperm.slane %v734_v13, 0  ;;  %v556_v53 = vld [vmem:[%s1031_s27 + $0x8] sm:$0xff] }
  0x3e   : > { %vm439_vm5 = vcmp.ne.s32.totalorder %v431_v14, %v864_v7  ;;  %v508_v28 = vperm.slane %v735_v15, 0 }
  0x3f   : > { %v736_v29 = vsel %vm439_vm5, 1.0, %v802_v16  ;;  %v518_v4 = vmul.f32 %v899_v17, %v506_v21  ;;  %v519_v5 = vmul.f32 %v902_v18, %v507_v26  ;;  %v510_v6 = vmul.f32 %v958_v61, %v506_v21  ;;  %v545_v16 = vld [vmem:[%s1047_s30 + $0x8] sm:$0xff]  ;;  %v544_v56 = vld [vmem:[%s1047_s30] sm:$0xff] }
  0x40   : > { %v509_v1 = vperm.slane %v736_v29, 0  ;;  %v511_v36 = vmul.f32 %v961_v62, %v507_v26  ;;  %v512_v37 = vmul.f32 %v970_v24, %v508_v28  ;;  %v514_v38 = vmul.f32 %v976_v30, %v506_v21 }
  0x41   : > { %v515_v39 = vmul.f32 %v982_v31, %v507_v26  ;;  %v516_v40 = vmul.f32 %v743_v51, %v508_v28  ;;  %v520_v7 = vmul.f32 %v905_v19, %v508_v28  ;;  %v532_v41 = vsel %vm316_vm0, %v518_v4, 0.0 }
  0x42   : > { %v533_v17 = vsel %vm316_vm0, %v519_v5, 0.0  ;;  %v513_v18 = vmul.f32 %v985_v34, %v509_v1  ;;  %v517_v42 = vmul.f32 %v744_v60, %v509_v1  ;;  %v522_v2 = vadd.f32 %v511_v36, %v510_v6 }
  0x43   : > { %v527_v61 = vadd.f32 %v515_v39, %v514_v38  ;;  %v534_v24 = vadd.f32 %v533_v17, %v532_v41  ;;  %v521_v31 = vmul.f32 %v908_v20, %v509_v1  ;;  %v535_v19 = vsel %vm316_vm0, %v520_v7, 0.0  ;;  %v557_v20 = vld [vmem:[%s1031_s27 + $0x10] sm:$0x7] }
  0x44   : > { %v523_v30 = vadd.f32 %v522_v2, %v512_v37 }
  0x45   : > { %v528_v62 = vadd.f32 %v527_v61, %v516_v40  ;;  %v536_v34 = vadd.f32 %v535_v19, %v534_v24  ;;  %v537_v45 = vsel %vm316_vm0, %v521_v31, 0.0 }
  0x46   : > { %v524_v44 = vadd.f32 %v523_v30, %v513_v18 }
  0x47   : > { %v529_v43 = vadd.f32 %v528_v62, %v517_v42  ;;  %v538_v46 = vadd.f32 %v537_v45, %v536_v34 }
  0x48   : > { %525 = vadd.xlane.f32.xlu1 %v524_v44 }
  0x49   : > { %530 = vadd.xlane.f32.xlu2 %v529_v43 }
  0x51   : > { %539 = vadd.xlane.f32.xlu2 %v538_v46 }
  0x8e   : > { %v502_v47 = vpop.xlane.xlu1 %501 }
  0x8f   : > { %v560_v48 = vadd.f32 %v557_v20, %v502_v47 }
  0x91   : > { %563 = vst.msk [vmem:[%s1031_s27 + $0x10] sm:$0x7] %vm293_vm7, %v560_v48 }
  0x96   : > { %v488_v51 = vpop.xlane.xlu0 %487 }
  0x97   : > { %v558_v52 = vadd.f32 %v555_v49, %v488_v51 }
  0x99   : > { %561 = vst.msk [vmem:[%s1031_s27] sm:$0xff] %vm290_vm6, %v558_v52 }
  0xaa   : > { %v493_v54 = vpop.xlane.xlu0 %492 }
  0xab   : > { %v559_v55 = vadd.f32 %v556_v53, %v493_v54 }
  0xad   : > { %562 = vst.msk [vmem:[%s1031_s27 + $0x8] sm:$0xff] %vm290_vm6, %v559_v55 }
  0xbb   : > { %v526_v58 = vpop.xlane.xlu1 %525 }
  0xbc   : > { %v531_v57 = vpop.xlane.xlu2 %530  ;;  %v547_v60 = vadd.f32 %v544_v56, %v526_v58 }
  0xbd   : > { %v548_v59 = vadd.f32 %v545_v16, %v531_v57 }
  0xbe   : > { %551 = vst.msk [vmem:[%s1047_s30] sm:$0xff] %vm290_vm6, %v547_v60 }
  0xbf   : > { %552 = vst.msk [vmem:[%s1047_s30 + $0x8] sm:$0xff] %vm290_vm6, %v548_v59 }
  0xc4   : > { %v540_v0 = vpop.xlane.xlu2 %539 }
  0xc5   : > { %v549_v3 = vadd.f32 %v546_v63, %v540_v0 }
  0xc7   : > { %554 = vst.msk [vmem:[%s1047_s30 + $0x10] sm:$0x7] %vm293_vm7, %v549_v3 }
  0xc8 PF: > { %s14_s14 = sadd.s32 1, %s800_s14   ;;  %s1117_s12 = smov %s796_s13 }
  0xc9   : > { %p11_p5 = scmp.ge.s32.totalorder %s14_s14, 4   ;;  %s1118_s13 = smov %s1120_s15 }
  0xcb   :  { %13 = sbr.rel (!%p11_p5) target bundleno = 2 (0x2), region = 77 }

</bundles_post_ra>
